<compile_context>
chip_gen: v7x
topology: tpu7x:2x2x1
jax: 0.10.0
libtpu: 0.0.40
codegen_flags: <defaults>
</compile_context>

<pallas_src>
import jax
import jax.numpy as jnp
from jax.experimental import pallas as pl
from jax.experimental.pallas import tpu as pltpu


_LANE = 128
_SUBLANE = 8
# Conservative per-kernel VMEM budget / limit valid on every generation
# (v7x: 64 MiB physical, 32 MiB default scoped).
_VMEM_BUDGET = 28 << 20
_VMEM_LIMIT = 32 << 20


def _round_up(n, m):
    return ((n + m - 1) // m) * m


def _pad_to(arr, shape):
    pads = [(0, t - s) for s, t in zip(arr.shape, shape)]
    if all(p == (0, 0) for p in pads):
        return arr
    return jnp.pad(arr, pads)


def _pick_row_tile(requested, m, d_in_p, d_hid_p, itemsize):
    """Largest 8-aligned row tile <= requested that fits the VMEM budget."""
    rt = min(requested, _round_up(m, _SUBLANE))
    rt = max(_SUBLANE, _round_up(rt, _SUBLANE))
    while True:
        # x / residual / out row tiles, double-buffered by the pipeline.
        row_bytes = 3 * 2 * rt * d_in_p * itemsize
        # Resident weights + biases (pipeline still allocates 2 buffers each,
        # but with a constant index_map they are only DMA'd once).
        w_bytes = 2 * (3 * d_in_p * d_hid_p + 2 * d_hid_p + d_in_p) * itemsize
        # f32 intermediates (h_main, h_res, fused, out) live during compute.
        tmp_bytes = 4 * rt * max(d_in_p, d_hid_p) * 4
        if row_bytes + w_bytes + tmp_bytes <= _VMEM_BUDGET or rt <= _SUBLANE:
            return rt
        rt = max(_SUBLANE, (rt // 2) // _SUBLANE * _SUBLANE)


def _hourglass_kernel(x_ref, r_ref, wm_ref, bm_ref, wr_ref, br_ref,
                      wf_ref, bf_ref, o_ref):
    # All three matmuls + SiLU gating fused on one row tile of tokens.
    # MXU operands stay in their native dtype; accumulate in f32.
    h_main = jnp.dot(x_ref[...], wm_ref[...],
                     preferred_element_type=jnp.float32)
    h_main = h_main + bm_ref[...].astype(jnp.float32)
    h_main = h_main * jax.nn.sigmoid(h_main)           # SiLU, f32 on VPU/EUP

    h_res = jnp.dot(r_ref[...], wr_ref[...],
                    preferred_element_type=jnp.float32)
    h_res = h_res + br_ref[...].astype(jnp.float32)
    h_res = h_res * jax.nn.sigmoid(h_res)

    fused = (h_main * h_res).astype(wf_ref.dtype)      # weight dtype for MXU

    out = jnp.dot(fused, wf_ref[...], preferred_element_type=jnp.float32)
    out = out + bf_ref[...].astype(jnp.float32)
    o_ref[...] = out.astype(o_ref.dtype)


def hourglass_fusion_layer(x, residual, params, *, row_tile=512):
    """x, residual: (..., D). params: pre-transposed weights / (1, out) biases."""
    assert x.shape == residual.shape
    *lead, d_in = x.shape
    m = 1
    for s in lead:
        m *= s

    wm, bm = params["w_main"], params["b_main"]    # (D, Dh), (1, Dh)
    wr, br = params["w_res"], params["b_res"]      # (D, Dh), (1, Dh)
    wf, bf = params["w_fuse"], params["b_fuse"]    # (Dh, D), (1, D)
    d_hid = wm.shape[1]

    # Lane-dense feature dims.
    d_in_p = _round_up(d_in, _LANE)
    d_hid_p = _round_up(d_hid, _LANE)

    itemsize = jnp.dtype(x.dtype).itemsize
    rt = _pick_row_tile(row_tile, m, d_in_p, d_hid_p, itemsize)
    m_p = _round_up(m, rt)

    x2 = _pad_to(x.reshape(m, d_in), (m_p, d_in_p))
    r2 = _pad_to(residual.reshape(m, d_in), (m_p, d_in_p))
    wm_p = _pad_to(wm, (d_in_p, d_hid_p))
    wr_p = _pad_to(wr, (d_in_p, d_hid_p))
    wf_p = _pad_to(wf, (d_hid_p, d_in_p))
    bm_p = _pad_to(bm, (1, d_hid_p))
    br_p = _pad_to(br, (1, d_hid_p))
    bf_p = _pad_to(bf, (1, d_in_p))

    grid = (m_p // rt,)

    cost = pl.CostEstimate(
        flops=2 * m * (2 * d_in * d_hid + d_hid * d_in),
        transcendentals=2 * m * d_hid,
        bytes_accessed=(3 * m * d_in + 3 * d_in * d_hid + 2 * d_hid + d_in)
        * itemsize,
    )

    # TODO(synk): for very large D (>~4K) add a K-reduction grid axis for the
    # first two matmuls and N-panel tiling of the fuse matmul so VMEM use is
    # bounded independently of the model width.
    out = pl.pallas_call(
        _hourglass_kernel,
        out_shape=jax.ShapeDtypeStruct((m_p, d_in_p), x.dtype),
        grid_spec=pltpu.PrefetchScalarGridSpec(
            num_scalar_prefetch=0,
            grid=grid,
            in_specs=[
                pl.BlockSpec((rt, d_in_p), lambda i: (i, 0)),       # x tile
                pl.BlockSpec((rt, d_in_p), lambda i: (i, 0)),       # residual tile
                pl.BlockSpec((d_in_p, d_hid_p), lambda i: (0, 0)),  # W_main (resident)
                pl.BlockSpec((1, d_hid_p), lambda i: (0, 0)),       # b_main
                pl.BlockSpec((d_in_p, d_hid_p), lambda i: (0, 0)),  # W_res
                pl.BlockSpec((1, d_hid_p), lambda i: (0, 0)),       # b_res
                pl.BlockSpec((d_hid_p, d_in_p), lambda i: (0, 0)),  # W_fuse
                pl.BlockSpec((1, d_in_p), lambda i: (0, 0)),        # b_fuse
            ],
            out_specs=pl.BlockSpec((rt, d_in_p), lambda i: (i, 0)),
        ),
        compiler_params=pltpu.CompilerParams(
            dimension_semantics=("parallel",),
            vmem_limit_bytes=_VMEM_LIMIT,
        ),
        cost_estimate=cost,
    )(x2, r2, wm_p, bm_p, wr_p, br_p, wf_p, bf_p)

    return out[:m, :d_in].reshape(*lead, d_in)


def init_params(key, input_dim, downscale_ratio, dtype=jnp.float32):
    """Deterministic synthetic init (PyTorch Linear-style uniform bounds)."""
    d_hid = input_dim // downscale_ratio
    ks = jax.random.split(key, 6)

    def lin(kw, kb, fan_in, fan_out):
        bound = 1.0 / (fan_in ** 0.5)
        w = jax.random.uniform(kw, (fan_in, fan_out), dtype, -bound, bound)
        b = jax.random.uniform(kb, (1, fan_out), dtype, -bound, bound)
        return w, b

    w_main, b_main = lin(ks[0], ks[1], input_dim, d_hid)
    w_res, b_res = lin(ks[2], ks[3], input_dim, d_hid)
    w_fuse, b_fuse = lin(ks[4], ks[5], d_hid, input_dim)
    return {
        "w_main": w_main, "b_main": b_main,
        "w_res": w_res, "b_res": b_res,
        "w_fuse": w_fuse, "b_fuse": b_fuse,
    }


def reference(x, residual, params):
    h1 = jax.nn.silu(x @ params["w_main"] + params["b_main"][0])
    h2 = jax.nn.silu(residual @ params["w_res"] + params["b_res"][0])
    return (h1 * h2) @ params["w_fuse"] + params["b_fuse"][0]


if __name__ == "__main__":
    input_dim = 32
    downscale_ratio = 4
    batch, seq = 2, 8

    key = jax.random.PRNGKey(0)
    k_params, kx, kr = jax.random.split(key, 3)

    params = init_params(k_params, input_dim, downscale_ratio)
    x = jax.random.normal(kx, (batch, seq, input_dim), jnp.float32)
    residual = jax.random.normal(kr, (batch, seq, input_dim), jnp.float32)

    out = hourglass_fusion_layer(x, residual, params)
    out = jax.block_until_ready(out)

    ref = reference(x, residual, params)
    assert out.shape == (batch, seq, input_dim)
    assert jnp.allclose(out, ref, atol=1e-5, rtol=1e-5), "mismatch vs reference"

    print("KERNEL_OK")
</pallas_src>

<mosaic_0001>
module attributes {stable_mosaic.version = 11 : i64} {
  func.func @_hourglass_kernel(%arg0: i32, %arg1: memref<16x128xf32, #tpu.memory_space<vmem>>, %arg2: memref<16x128xf32, #tpu.memory_space<vmem>>, %arg3: memref<128x128xf32, #tpu.memory_space<vmem>>, %arg4: memref<1x128xf32, #tpu.memory_space<vmem>>, %arg5: memref<128x128xf32, #tpu.memory_space<vmem>>, %arg6: memref<1x128xf32, #tpu.memory_space<vmem>>, %arg7: memref<128x128xf32, #tpu.memory_space<vmem>>, %arg8: memref<1x128xf32, #tpu.memory_space<vmem>>, %arg9: memref<16x128xf32, #tpu.memory_space<vmem>>) attributes {dimension_semantics = [#tpu.dimension_semantics<parallel>], iteration_bounds = array<i64: 1>, scalar_prefetch = 0 : i64, scratch_operands = 0 : i64, tpu.core_type = #tpu.core_type<tc>, window_params = [{transform_indices = @transform_0, window_bounds = array<i64: 16, 128>}, {transform_indices = @transform_1, window_bounds = array<i64: 16, 128>}, {pipeline_mode = #tpu.pipeline_mode<synchronous>, transform_indices = @transform_2, window_bounds = array<i64: 128, 128>}, {pipeline_mode = #tpu.pipeline_mode<synchronous>, transform_indices = @transform_3, window_bounds = array<i64: 1, 128>}, {pipeline_mode = #tpu.pipeline_mode<synchronous>, transform_indices = @transform_4, window_bounds = array<i64: 128, 128>}, {pipeline_mode = #tpu.pipeline_mode<synchronous>, transform_indices = @transform_5, window_bounds = array<i64: 1, 128>}, {pipeline_mode = #tpu.pipeline_mode<synchronous>, transform_indices = @transform_6, window_bounds = array<i64: 128, 128>}, {pipeline_mode = #tpu.pipeline_mode<synchronous>, transform_indices = @transform_7, window_bounds = array<i64: 1, 128>}, {transform_indices = @transform_8, window_bounds = array<i64: 16, 128>}]} {
    %c0 = arith.constant 0 : index
    %c0_0 = arith.constant 0 : index
    %0 = vector.load %arg1[%c0, %c0_0] : memref<16x128xf32, #tpu.memory_space<vmem>>, vector<16x128xf32>
    %c0_1 = arith.constant 0 : index
    %c0_2 = arith.constant 0 : index
    %1 = vector.load %arg3[%c0_1, %c0_2] : memref<128x128xf32, #tpu.memory_space<vmem>>, vector<128x128xf32>
    %cst = arith.constant dense<0.000000e+00> : vector<16x128xf32>
    %2 = tpu.matmul %0, %1, %cst {dimension_numbers = #tpu.dot_dimension_numbers<[1], [0], [0], [1], [0, 0, 1, 1], [], []>} : vector<16x128xf32>, vector<128x128xf32>, vector<16x128xf32> -> vector<16x128xf32>
    %c0_3 = arith.constant 0 : index
    %c0_4 = arith.constant 0 : index
    %3 = vector.load %arg4[%c0_3, %c0_4] : memref<1x128xf32, #tpu.memory_space<vmem>>, vector<1x128xf32>
    %4 = vector.broadcast %3 : vector<1x128xf32> to vector<16x128xf32>
    %5 = arith.addf %2, %4 : vector<16x128xf32>
    %6 = arith.negf %5 : vector<16x128xf32>
    %7 = math.exp %6 : vector<16x128xf32>
    %cst_5 = arith.constant 1.000000e+00 : f32
    %8 = vector.broadcast %cst_5 : f32 to vector<16x128xf32>
    %9 = arith.addf %8, %7 : vector<16x128xf32>
    %10 = arith.divf %8, %9 : vector<16x128xf32>
    %11 = arith.mulf %5, %10 : vector<16x128xf32>
    %c0_6 = arith.constant 0 : index
    %c0_7 = arith.constant 0 : index
    %12 = vector.load %arg2[%c0_6, %c0_7] : memref<16x128xf32, #tpu.memory_space<vmem>>, vector<16x128xf32>
    %c0_8 = arith.constant 0 : index
    %c0_9 = arith.constant 0 : index
    %13 = vector.load %arg5[%c0_8, %c0_9] : memref<128x128xf32, #tpu.memory_space<vmem>>, vector<128x128xf32>
    %cst_10 = arith.constant dense<0.000000e+00> : vector<16x128xf32>
    %14 = tpu.matmul %12, %13, %cst_10 {dimension_numbers = #tpu.dot_dimension_numbers<[1], [0], [0], [1], [0, 0, 1, 1], [], []>} : vector<16x128xf32>, vector<128x128xf32>, vector<16x128xf32> -> vector<16x128xf32>
    %c0_11 = arith.constant 0 : index
    %c0_12 = arith.constant 0 : index
    %15 = vector.load %arg6[%c0_11, %c0_12] : memref<1x128xf32, #tpu.memory_space<vmem>>, vector<1x128xf32>
    %16 = vector.broadcast %15 : vector<1x128xf32> to vector<16x128xf32>
    %17 = arith.addf %14, %16 : vector<16x128xf32>
    %18 = arith.negf %17 : vector<16x128xf32>
    %19 = math.exp %18 : vector<16x128xf32>
    %cst_13 = arith.constant 1.000000e+00 : f32
    %20 = vector.broadcast %cst_13 : f32 to vector<16x128xf32>
    %21 = arith.addf %20, %19 : vector<16x128xf32>
    %22 = arith.divf %20, %21 : vector<16x128xf32>
    %23 = arith.mulf %17, %22 : vector<16x128xf32>
    %24 = arith.mulf %11, %23 : vector<16x128xf32>
    %c0_14 = arith.constant 0 : index
    %c0_15 = arith.constant 0 : index
    %25 = vector.load %arg7[%c0_14, %c0_15] : memref<128x128xf32, #tpu.memory_space<vmem>>, vector<128x128xf32>
    %cst_16 = arith.constant dense<0.000000e+00> : vector<16x128xf32>
    %26 = tpu.matmul %24, %25, %cst_16 {dimension_numbers = #tpu.dot_dimension_numbers<[1], [0], [0], [1], [0, 0, 1, 1], [], []>} : vector<16x128xf32>, vector<128x128xf32>, vector<16x128xf32> -> vector<16x128xf32>
    %c0_17 = arith.constant 0 : index
    %c0_18 = arith.constant 0 : index
    %27 = vector.load %arg8[%c0_17, %c0_18] : memref<1x128xf32, #tpu.memory_space<vmem>>, vector<1x128xf32>
    %28 = vector.broadcast %27 : vector<1x128xf32> to vector<16x128xf32>
    %29 = arith.addf %26, %28 : vector<16x128xf32>
    %c0_19 = arith.constant 0 : index
    %c0_20 = arith.constant 0 : index
    %30 = vector.load %arg9[%c0_19, %c0_20] : memref<16x128xf32, #tpu.memory_space<vmem>>, vector<16x128xf32>
    tpu.vector_store %arg9[%c0_19, %c0_20], %29 {strides = array<i32>} : memref<16x128xf32, #tpu.memory_space<vmem>>, vector<16x128xf32>,
    return
  }
  func.func @transform_0(%arg0: i32) -> (i32, i32) {
    %c0_i32 = arith.constant 0 : i32
    %c0_i32_0 = arith.constant 0 : i32
    return %arg0, %c0_i32 : i32, i32
  }
  func.func @transform_1(%arg0: i32) -> (i32, i32) {
    %c0_i32 = arith.constant 0 : i32
    %c0_i32_0 = arith.constant 0 : i32
    return %arg0, %c0_i32 : i32, i32
  }
  func.func @transform_2(%arg0: i32) -> (i32, i32) {
    %c0_i32 = arith.constant 0 : i32
    %c0_i32_0 = arith.constant 0 : i32
    %c0_i32_1 = arith.constant 0 : i32
    return %c0_i32, %c0_i32_0 : i32, i32
  }
  func.func @transform_3(%arg0: i32) -> (i32, i32) {
    %c0_i32 = arith.constant 0 : i32
    %c0_i32_0 = arith.constant 0 : i32
    %c0_i32_1 = arith.constant 0 : i32
    return %c0_i32, %c0_i32_0 : i32, i32
  }
  func.func @transform_4(%arg0: i32) -> (i32, i32) {
    %c0_i32 = arith.constant 0 : i32
    %c0_i32_0 = arith.constant 0 : i32
    %c0_i32_1 = arith.constant 0 : i32
    return %c0_i32, %c0_i32_0 : i32, i32
  }
  func.func @transform_5(%arg0: i32) -> (i32, i32) {
    %c0_i32 = arith.constant 0 : i32
    %c0_i32_0 = arith.constant 0 : i32
    %c0_i32_1 = arith.constant 0 : i32
    return %c0_i32, %c0_i32_0 : i32, i32
  }
  func.func @transform_6(%arg0: i32) -> (i32, i32) {
    %c0_i32 = arith.constant 0 : i32
    %c0_i32_0 = arith.constant 0 : i32
    %c0_i32_1 = arith.constant 0 : i32
    return %c0_i32, %c0_i32_0 : i32, i32
  }
  func.func @transform_7(%arg0: i32) -> (i32, i32) {
    %c0_i32 = arith.constant 0 : i32
    %c0_i32_0 = arith.constant 0 : i32
    %c0_i32_1 = arith.constant 0 : i32
    return %c0_i32, %c0_i32_0 : i32, i32
  }
  func.func @transform_8(%arg0: i32) -> (i32, i32) {
    %c0_i32 = arith.constant 0 : i32
    %c0_i32_0 = arith.constant 0 : i32
    return %arg0, %c0_i32 : i32, i32
  }
}

</mosaic_0001>

<bundles_post_ra>
// kernel: tpu_custom_call.1
= control target key start
LH: loop header
LB: loop body
LE: loop exit
PB: predicated region body
PF: predicated region fallthrough
CT: control target
= control target key end

     0   :  { %13 = vsyncpa [#allocation3], 0  ;;  %s1039_s0 = inlined_call_operand.hbm [shape: f32[16,128], index: 0, kind: input, shape index: {}]   ;;  %s1040_s1 = inlined_call_operand.hbm [shape: f32[16,128], index: 1, kind: input, shape index: {}]   ;;  %s1041_s2 = inlined_call_operand.hbm [shape: f32[128,128], index: 2, kind: input, shape index: {}]   ;;  %s1042_s3 = inlined_call_operand.vmem [shape: f32[1,128], index: 3, kind: input, shape index: {}]   ;;  %s1043_s4 = inlined_call_operand.hbm [shape: f32[128,128], index: 4, kind: input, shape index: {}]   ;;  %s1044_s5 = inlined_call_operand.vmem [shape: f32[1,128], index: 5, kind: input, shape index: {}]   ;;  %s1045_s6 = inlined_call_operand.hbm [shape: f32[128,128], index: 6, kind: input, shape index: {}]   ;;  %s1046_s7 = inlined_call_operand.vmem [shape: f32[1,128], index: 7, kind: input, shape index: {}]   ;;  %s1047_s8 = inlined_call_operand.hbm [shape: f32[16,128], index: 8, kind: output, shape index: {}]  }
   0x1   :  { %14 = vsyncpa [#allocation6], 0 }
   0x2   :  { %15 = vsyncpa [#allocation9], 0 }
   0x3   :  { %16 = vsyncpa [#allocation4], 0  ;;  %s873_s27 = smov [#allocation5]   ;;  %s874_s29 = smov [#allocation8]  }
   0x4   :  { %s34_s28 = sshll.u32 %s873_s27, 4  ;;  %s60_s30 = sshll.u32 %s874_s29, 4  ;;  %s35_s28 = int_to_ptr.vmem [resolvable:$true] %s34_s28  ;;  %s926_s30 = int_to_ptr.vmem [resolvable:$true] %s60_s30 }
   0x5   :  { %s733_s11 = scalar_lea.hbm %s1040_s1, 256 }
   0x6   :  { %p734_p0 = scmp.ne.s32.totalorder %s1040_s1, %s733_s11  ;;  %p737_p1 = scmp.lt.u32.totalorder %s733_s11, %s1040_s1 }
   0x8   :  { %p739_p2 = pnand %p737_p1, %p734_p0 }
   0xa   :  { %742 = shalt.err (!%p739_p2)
}
   0xb   :  { %s743_s16 = scalar_lea.vmem %s35_s28, 256  ;;  %p748_p4 = scmp.lt.s32.totalorder %s35_s28, %s35_s28 }
   0xc   :  { %p744_p3 = scmp.ne.s32.totalorder %s35_s28, %s743_s16  ;;  %p749_p5 = scmp.lt.s32.totalorder %s743_s16, %s743_s16 }
   0xe   :  { %p750_p6 = por %p749_p5, %p748_p4 }
  0x10   :  { %p751_p7 = pnand %p750_p6, %p744_p3 }
  0x12   :  { %754 = shalt.err (!%p751_p7)
}
  0x13   :  { %s875_s17 = smov 128   ;;  %s876_s18 = smov 8  }
  0x14   :  { %40 = dma.hbm_to_vmem [thread:$0]  %s1040_s1, 256, %s35_s28, [#allocation6], %s875_s17, %s875_s17, %s876_s18  }
  0x15   :  { %s755_s23 = scalar_lea.hbm %s1043_s4, 2048 }
  0x16   :  { %p756_p8 = scmp.ne.s32.totalorder %s1043_s4, %s755_s23  ;;  %p759_p9 = scmp.lt.u32.totalorder %s755_s23, %s1043_s4 }
  0x18   :  { %p761_p10 = pnand %p759_p9, %p756_p8 }
  0x1a   :  { %764 = shalt.err (!%p761_p10)
}
  0x1b   :  { %s765_s29 = scalar_lea.vmem %s926_s30, 2048  ;;  %p770_p12 = scmp.lt.s32.totalorder %s926_s30, %s926_s30 }
  0x1c   :  { %p766_p11 = scmp.ne.s32.totalorder %s926_s30, %s765_s29  ;;  %p771_p13 = scmp.lt.s32.totalorder %s765_s29, %s765_s29 }
  0x1e   :  { %p772_p0 = por %p771_p13, %p770_p12 }
  0x20   :  { %p773_p1 = pnand %p772_p0, %p766_p11 }
  0x22   :  { %776 = shalt.err (!%p773_p1)
}
  0x23   :  { %66 = dma.hbm_to_vmem [thread:$0]  %s1043_s4, 2048, %s926_s30, [#allocation9], %s875_s17, %s875_s17, %s876_s18  }
  0x24   :  { %s877_s9 = smov [#allocation2]   ;;  %s878_s11 = smov [#allocation7]  }
  0x25   :  { %s22_s10 = sshll.u32 %s877_s9, 4  ;;  %s46_s12 = sshll.u32 %s878_s11, 4  ;;  %s23_s10 = int_to_ptr.vmem [resolvable:$true] %s22_s10  ;;  %s963_s12 = int_to_ptr.vmem [resolvable:$true] %s46_s12 }
  0x26   :  { %s777_s15 = scalar_lea.hbm %s1039_s0, 256 }
  0x27   :  { %p778_p2 = scmp.ne.s32.totalorder %s1039_s0, %s777_s15  ;;  %p781_p3 = scmp.lt.u32.totalorder %s777_s15, %s1039_s0 }
  0x29   :  { %p783_p4 = pnand %p781_p3, %p778_p2 }
  0x2b   :  { %786 = shalt.err (!%p783_p4)
}
  0x2c   :  { %s787_s4 = scalar_lea.vmem %s23_s10, 256  ;;  %p792_p6 = scmp.lt.s32.totalorder %s23_s10, %s23_s10 }
  0x2d   :  { %p788_p5 = scmp.ne.s32.totalorder %s23_s10, %s787_s4  ;;  %p793_p7 = scmp.lt.s32.totalorder %s787_s4, %s787_s4 }
  0x2f   :  { %p794_p8 = por %p793_p7, %p792_p6 }
  0x31   :  { %p795_p9 = pnand %p794_p8, %p788_p5 }
  0x33   :  { %798 = shalt.err (!%p795_p9)
}
  0x34   :  { %28 = dma.hbm_to_vmem [thread:$0]  %s1039_s0, 256, %s23_s10, [#allocation3], %s875_s17, %s875_s17, %s876_s18  }
  0x35   :  { %s799_s25 = scalar_lea.hbm %s1041_s2, 2048 }
  0x36   :  { %p800_p10 = scmp.ne.s32.totalorder %s1041_s2, %s799_s25  ;;  %p803_p11 = scmp.lt.u32.totalorder %s799_s25, %s1041_s2 }
  0x38   :  { %p805_p12 = pnand %p803_p11, %p800_p10 }
  0x3a   :  { %808 = shalt.err (!%p805_p12)
}
  0x3b   :  { %s809_s28 = scalar_lea.vmem %s963_s12, 2048  ;;  %p814_p0 = scmp.lt.s32.totalorder %s963_s12, %s963_s12 }
  0x3c   :  { %p810_p13 = scmp.ne.s32.totalorder %s963_s12, %s809_s28  ;;  %p815_p1 = scmp.lt.s32.totalorder %s809_s28, %s809_s28 }
  0x3e   :  { %p816_p2 = por %p815_p1, %p814_p0 }
  0x40   :  { %p817_p3 = pnand %p816_p2, %p810_p13 }
  0x42   :  { %820 = shalt.err (!%p817_p3)
}
  0x43   :  { %52 = dma.hbm_to_vmem [thread:$0]  %s1041_s2, 2048, %s963_s12, [#allocation6], %s875_s17, %s875_s17, %s876_s18  }
  0x44   :  { %s879_s10 = smov [#allocation10]   ;;  %s821_s15 = scalar_lea.hbm %s1045_s6, 2048 }
  0x45   :  { %s74_s11 = sshll.u32 %s879_s10, 4  ;;  %p822_p4 = scmp.ne.s32.totalorder %s1045_s6, %s821_s15  ;;  %s75_s11 = int_to_ptr.vmem [resolvable:$true] %s74_s11 }
  0x46   :  { %p825_p5 = scmp.lt.u32.totalorder %s821_s15, %s1045_s6 }
  0x48   :  { %p827_p6 = pnand %p825_p5, %p822_p4 }
  0x4a   :  { %830 = shalt.err (!%p827_p6)
}
  0x4b   :  { %s831_s4 = scalar_lea.vmem %s75_s11, 2048  ;;  %p836_p8 = scmp.lt.s32.totalorder %s75_s11, %s75_s11 }
  0x4c   :  { %p832_p7 = scmp.ne.s32.totalorder %s75_s11, %s831_s4  ;;  %p837_p9 = scmp.lt.s32.totalorder %s831_s4, %s831_s4 }
  0x4e   :  { %p838_p10 = por %p837_p9, %p836_p8 }
  0x50   :  { %p839_p11 = pnand %p838_p10, %p832_p7 }
  0x52   :  { %842 = shalt.err (!%p839_p11)
}
  0x53   :  { %80 = dma.hbm_to_vmem [thread:$0]  %s1045_s6, 2048, %s75_s11, [#allocation9], %s875_s17, %s875_s17, %s876_s18  }
  0x54   :  { %865 = dma.done.wait [#allocation3], 256  }
  0x55   :  { %866 = vsyncadd [#allocation3], 4294967040 }
  0x56   :  { %867 = dma.done.wait [#allocation6], 2304  }
  0x57   :  { %868 = vsyncadd [#allocation6], 4294964992 }
  0x58   :  { %869 = dma.done.wait [#allocation9], 4096  }
  0x59   :  { %870 = vsyncadd [#allocation9], 4294963200  ;;  %v100_v0 = vld [vmem:[#allocation7] sm:$0xff]  ;;  %v101_v1 = vld [vmem:[#allocation7 + $0x8] sm:$0xff]  ;;  %s880_s24 = smov [#allocation11]  }
  0x5a   :  { %v214_v2 = vld [vmem:[#allocation8] sm:$0xff]  ;;  %v613_v3 = vpack.c.bf16 %v101_v1, %v100_v0  ;;  %v215_v4 = vld [vmem:[#allocation8 + $0x8] sm:$0xff]  ;;  %v102_v5 = vld [vmem:[#allocation7 + $0x10] sm:$0xff]  ;;  %s433_s25 = sshll.u32 %s880_s24, 4  ;;  %s434_s25 = int_to_ptr.vmem [resolvable:$true] %s433_s25 }
  0x5b   :  { %v103_v6 = vld [vmem:[#allocation7 + $0x18] sm:$0xff]  ;;  %v645_v7 = vpack.c.bf16 %v215_v4, %v214_v2  ;;  %v216_v9 = vld [vmem:[#allocation8 + $0x10] sm:$0xff]  ;;  %v104_v11 = vld [vmem:[#allocation7 + $0x20] sm:$0xff]  ;;  %s843_s26 = scalar_lea.vmem %s434_s25, 256  ;;  %p848_p13 = scmp.lt.s32.totalorder %s434_s25, %s434_s25 }
  0x5c   :  { %v617_v8 = vpack.c.bf16 %v103_v6, %v102_v5  ;;  %v217_v10 = vld [vmem:[#allocation8 + $0x18] sm:$0xff]  ;;  %614 = vmatprep.subr.bf16.mxu0 %v613_v3  ;;  %v105_v13 = vld [vmem:[#allocation7 + $0x28] sm:$0xff]  ;;  %v218_v14 = vld [vmem:[#allocation8 + $0x20] sm:$0xff]  ;;  %p844_p12 = scmp.ne.s32.totalorder %s434_s25, %s843_s26  ;;  %p849_p0 = scmp.lt.s32.totalorder %s843_s26, %s843_s26 }
  0x5d   :  { %v649_v12 = vpack.c.bf16 %v217_v10, %v216_v9  ;;  %v219_v15 = vld [vmem:[#allocation8 + $0x28] sm:$0xff]  ;;  %646 = vmatprep.subr.bf16.mxu1 %v645_v7  ;;  %616 = vmatpush3.bf16.msra.mxu0 %v613_v3  ;;  %v621_v16 = vpack.c.bf16 %v105_v13, %v104_v11  ;;  %v106_v18 = vld [vmem:[#allocation7 + $0x30] sm:$0xff]  ;;  %v107_v19 = vld [vmem:[#allocation7 + $0x38] sm:$0xff] }
  0x5e   :  { %648 = vmatpush3.bf16.msra.mxu1 %v645_v7  ;;  %618 = vmatprep.subr.bf16.mxu0 %v617_v8  ;;  %v653_v17 = vpack.c.bf16 %v219_v15, %v218_v14  ;;  %v220_v20 = vld [vmem:[#allocation8 + $0x30] sm:$0xff]  ;;  %v221_v21 = vld [vmem:[#allocation8 + $0x38] sm:$0xff]  ;;  %v625_v22 = vpack.c.bf16 %v107_v19, %v106_v18  ;;  %v108_v24 = vld [vmem:[#allocation7 + $0x40] sm:$0xff]  ;;  %p850_p1 = por %p849_p0, %p848_p13 }
  0x5f   :  { %650 = vmatprep.subr.bf16.mxu1 %v649_v12  ;;  %v657_v23 = vpack.c.bf16 %v221_v21, %v220_v20  ;;  %v109_v25 = vld [vmem:[#allocation7 + $0x48] sm:$0xff]  ;;  %v98_v26 = vld [vmem:[#allocation2] sm:$0xff]  ;;  %v212_v29 = vld [vmem:[#allocation5] sm:$0xff] }
  0x60   :  { %v222_v27 = vld [vmem:[#allocation8 + $0x40] sm:$0xff]  ;;  %v223_v28 = vld [vmem:[#allocation8 + $0x48] sm:$0xff]  ;;  %540 = vmatprep.mubr.f32.mxu0 %v98_v26  ;;  %575 = vmatprep.mubr.f32.mxu1 %v212_v29  ;;  %v629_v30 = vpack.c.bf16 %v109_v25, %v108_v24  ;;  %v110_v32 = vld [vmem:[#allocation7 + $0x50] sm:$0xff]  ;;  %p851_p2 = pnand %p850_p1, %p844_p12 }
  0x61   :  { %620 = vmatpush3.bf16.msra.mxu0 %v617_v8  ;;  %v661_v31 = vpack.c.bf16 %v223_v28, %v222_v27  ;;  %v111_v33 = vld [vmem:[#allocation7 + $0x58] sm:$0xff]  ;;  %v224_v34 = vld [vmem:[#allocation8 + $0x50] sm:$0xff]  ;;  %v112_v38 = vld [vmem:[#allocation7 + $0x60] sm:$0xff] }
  0x62   :  { %652 = vmatpush3.bf16.msra.mxu1 %v649_v12  ;;  %622 = vmatprep.subr.bf16.mxu0 %v621_v16  ;;  %v225_v35 = vld [vmem:[#allocation8 + $0x58] sm:$0xff]  ;;  %v633_v36 = vpack.c.bf16 %v111_v33, %v110_v32  ;;  %v113_v39 = vld [vmem:[#allocation7 + $0x68] sm:$0xff]  ;;  %v226_v40 = vld [vmem:[#allocation8 + $0x60] sm:$0xff] }
  0x63   :  { %654 = vmatprep.subr.bf16.mxu1 %v653_v17  ;;  %v665_v37 = vpack.c.bf16 %v225_v35, %v224_v34  ;;  %v227_v41 = vld [vmem:[#allocation8 + $0x68] sm:$0xff]  ;;  %v637_v42 = vpack.c.bf16 %v113_v39, %v112_v38  ;;  %v114_v44 = vld [vmem:[#allocation7 + $0x70] sm:$0xff]  ;;  %v115_v45 = vld [vmem:[#allocation7 + $0x78] sm:$0xff] }
  0x64   :  { %v669_v43 = vpack.c.bf16 %v227_v41, %v226_v40  ;;  %v228_v46 = vld [vmem:[#allocation8 + $0x70] sm:$0xff]  ;;  %v229_v47 = vld [vmem:[#allocation8 + $0x78] sm:$0xff]  ;;  %v641_v48 = vpack.c.bf16 %v115_v45, %v114_v44  ;;  %v99_v50 = vld [vmem:[#allocation2 + $0x8] sm:$0xff] }
  0x65   :  { %624 = vmatpush3.bf16.msra.mxu0 %v621_v16  ;;  %v673_v49 = vpack.c.bf16 %v229_v47, %v228_v46  ;;  %v213_v51 = vld [vmem:[#allocation5 + $0x8] sm:$0xff]  ;;  %v328_v52 = vld [vmem:[#allocation10] sm:$0xff]  ;;  %v329_v53 = vld [vmem:[#allocation10 + $0x8] sm:$0xff] }
  0x66   :  { %656 = vmatpush3.bf16.msra.mxu1 %v653_v17  ;;  %626 = vmatprep.subr.bf16.mxu0 %v625_v22  ;;  %v677_v54 = vpack.c.bf16 %v329_v53, %v328_v52  ;;  %v330_v55 = vld [vmem:[#allocation10 + $0x10] sm:$0xff]  ;;  %v331_v56 = vld [vmem:[#allocation10 + $0x18] sm:$0xff]  ;;  %v332_v58 = vld [vmem:[#allocation10 + $0x20] sm:$0xff] }
  0x67   :  { %658 = vmatprep.subr.bf16.mxu1 %v657_v23  ;;  %v681_v57 = vpack.c.bf16 %v331_v56, %v330_v55  ;;  %v333_v59 = vld [vmem:[#allocation10 + $0x28] sm:$0xff]  ;;  %v334_v61 = vld [vmem:[#allocation10 + $0x30] sm:$0xff]  ;;  %v335_v62 = vld [vmem:[#allocation10 + $0x38] sm:$0xff] }
  0x68   :  { %v685_v60 = vpack.c.bf16 %v333_v59, %v332_v58  ;;  %v689_v63 = vpack.c.bf16 %v335_v62, %v334_v61  ;;  %v336_v0 = vld [vmem:[#allocation10 + $0x40] sm:$0xff]  ;;  %v337_v1 = vld [vmem:[#allocation10 + $0x48] sm:$0xff]  ;;  %v338_v3 = vld [vmem:[#allocation10 + $0x50] sm:$0xff] }
  0x69   :  { %628 = vmatpush3.bf16.msra.mxu0 %v625_v22  ;;  %v693_v2 = vpack.c.bf16 %v337_v1, %v336_v0  ;;  %v339_v4 = vld [vmem:[#allocation10 + $0x58] sm:$0xff]  ;;  %v340_v6 = vld [vmem:[#allocation10 + $0x60] sm:$0xff]  ;;  %v341_v7 = vld [vmem:[#allocation10 + $0x68] sm:$0xff] }
  0x6a   :  { %660 = vmatpush3.bf16.msra.mxu1 %v657_v23  ;;  %630 = vmatprep.subr.bf16.mxu0 %v629_v30  ;;  %v697_v5 = vpack.c.bf16 %v339_v4, %v338_v3  ;;  %v701_v8 = vpack.c.bf16 %v341_v7, %v340_v6  ;;  %v342_v9 = vld [vmem:[#allocation10 + $0x70] sm:$0xff]  ;;  %v343_v10 = vld [vmem:[#allocation10 + $0x78] sm:$0xff]  ;;  %v447_v12 = vld [vmem:[%s1042_s3] ss:$0 sm:$0xff] }
  0x6b   :  { %662 = vmatprep.subr.bf16.mxu1 %v661_v31  ;;  %v705_v11 = vpack.c.bf16 %v343_v10, %v342_v9  ;;  %v450_v13 = vld [vmem:[%s1044_s5] ss:$0 sm:$0xff] }
  0x6c   :  { %v453_v44 = vld [vmem:[%s1046_s7] ss:$0 sm:$0xff] }
  0x6d   :  { %632 = vmatpush3.bf16.msra.mxu0 %v629_v30 }
  0x6e   :  { %664 = vmatpush3.bf16.msra.mxu1 %v661_v31  ;;  %634 = vmatprep.subr.bf16.mxu0 %v633_v36 }
  0x6f   :  { %666 = vmatprep.subr.bf16.mxu1 %v665_v37 }
  0x71   :  { %636 = vmatpush3.bf16.msra.mxu0 %v633_v36 }
  0x72   :  { %668 = vmatpush3.bf16.msra.mxu1 %v665_v37  ;;  %638 = vmatprep.subr.bf16.mxu0 %v637_v42 }
  0x73   :  { %670 = vmatprep.subr.bf16.mxu1 %v669_v43 }
  0x75   :  { %640 = vmatpush3.bf16.msra.mxu0 %v637_v42 }
  0x76   :  { %672 = vmatpush3.bf16.msra.mxu1 %v669_v43  ;;  %642 = vmatprep.subr.bf16.mxu0 %v641_v48 }
  0x77   :  { %674 = vmatprep.subr.bf16.mxu1 %v673_v49 }
  0x79   :  { %644 = vmatpush3.bf16.msra.mxu0 %v641_v48 }
  0x7a   :  { %676 = vmatpush3.bf16.msra.mxu1 %v673_v49  ;;  %678 = vmatprep.subr.bf16.mxu0 %v677_v54 }
  0x7c   :  { %541 = vmatmul.mubr.f32.vlgmr.msra.gmra.mrb[0].mxu0 %v99_v50 }
  0x7d   :  { %576 = vmatmul.mubr.f32.vlgmr.msra.gmra.mrb[0].mxu1 %v213_v51  ;;  %680 = vmatpush3.bf16.msra.mxu0 %v677_v54 }
  0x7e   :  { %682 = vmatprep.subr.bf16.mxu0 %v681_v57 }
  0x81   :  { %684 = vmatpush3.bf16.msra.mxu0 %v681_v57 }
  0x82   :  { %686 = vmatprep.subr.bf16.mxu0 %v685_v60 }
  0x85   :  { %688 = vmatpush3.bf16.msra.mxu0 %v685_v60 }
  0x86   :  { %690 = vmatprep.subr.bf16.mxu0 %v689_v63 }
  0x89   :  { %692 = vmatpush3.bf16.msra.mxu0 %v689_v63 }
  0x8a   :  { %694 = vmatprep.subr.bf16.mxu0 %v693_v2 }
  0x8d   :  { %696 = vmatpush3.bf16.msra.mxu0 %v693_v2 }
  0x8e   :  { %698 = vmatprep.subr.bf16.mxu0 %v697_v5 }
  0x91   :  { %700 = vmatpush3.bf16.msra.mxu0 %v697_v5 }
  0x92   :  { %702 = vmatprep.subr.bf16.mxu0 %v701_v8 }
  0x95   :  { %704 = vmatpush3.bf16.msra.mxu0 %v701_v8 }
  0x96   :  { %706 = vmatprep.subr.bf16.mxu0 %v705_v11 }
  0x99   :  { %708 = vmatpush3.bf16.msra.mxu0 %v705_v11 }
 0x14f   :  { %v542_v14 = vpop.f32.mrb[0].mxu0 }
 0x150   :  { %v195_v15 = vadd.f32 %v542_v14, %v447_v12  ;;  %v577_v16 = vpop.f32.mrb[0].mxu1  ;;  %v189_v17 = vpop.f32.mrb[1].mxu0 }
 0x151   :  { %v309_v18 = vadd.f32 %v577_v16, %v450_v13  ;;  %v190_v19 = vadd.f32 %v447_v12, %v189_v17  ;;  %v303_v20 = vpop.f32.mrb[1].mxu1 }
 0x152   :  { %v449_v21 = vmul.f32 -1.442695, %v195_v15  ;;  %v304_v22 = vadd.f32 %v450_v13, %v303_v20 }
 0x153   :  { %v452_v23 = vmul.f32 -1.442695, %v309_v18  ;;  %v448_v24 = vmul.f32 -1.442695, %v190_v19 }
 0x154   :  { %717 = vpow2.f32 %v449_v21  ;;  %v451_v25 = vmul.f32 -1.442695, %v304_v22 }
 0x155   :  { %719 = vpow2.f32 %v452_v23 }
 0x156   :  { %721 = vpow2.f32 %v448_v24 }
 0x157   :  { %723 = vpow2.f32 %v451_v25 }
 0x15e   :  { %v718_v26 = vpop.eup %717 }
 0x15f   :  { %v720_v27 = vpop.eup %719  ;;  %v205_v28 = vadd.f32 1.0, %v718_v26 }
 0x160   :  { %v722_v29 = vpop.eup %721  ;;  %v319_v30 = vadd.f32 1.0, %v720_v27 }
 0x161   :  { %v724_v31 = vpop.eup %723  ;;  %725 = vrcp.f32 %v205_v28  ;;  %v204_v32 = vadd.f32 1.0, %v722_v29 }
 0x162   :  { %727 = vrcp.f32 %v319_v30  ;;  %v318_v33 = vadd.f32 1.0, %v724_v31 }
 0x163   :  { %729 = vrcp.f32 %v204_v32 }
 0x164   :  { %731 = vrcp.f32 %v318_v33 }
 0x16b   :  { %v726_v34 = vpop.eup %725 }
 0x16c   :  { %v728_v35 = vpop.eup %727  ;;  %v211_v36 = vmul.f32 %v726_v34, %v195_v15 }
 0x16d   :  { %v730_v37 = vpop.eup %729  ;;  %v325_v38 = vmul.f32 %v728_v35, %v309_v18 }
 0x16e   :  { %v732_v39 = vpop.eup %731  ;;  %v210_v40 = vmul.f32 %v730_v37, %v190_v19 }
 0x16f   :  { %v327_v41 = vmul.f32 %v325_v38, %v211_v36  ;;  %v324_v42 = vmul.f32 %v732_v39, %v304_v22 }
 0x171   :  { %v326_v43 = vmul.f32 %v324_v42, %v210_v40 }
 0x173   :  { %610 = vmatprep.mubr.f32.mxu0 %v326_v43 }
 0x174   :  { %611 = vmatmul.mubr.f32.vlgmr.msra.gmra.mrb[2].mxu0 %v327_v41 }
 0x247   :  { %v612_v45 = vpop.f32.mrb[2].mxu0 }
 0x248   :  { %v423_v46 = vadd.f32 %v612_v45, %v453_v44  ;;  %v417_v47 = vpop.f32.mrb[3].mxu0 }
 0x249   :  { %v418_v48 = vadd.f32 %v453_v44, %v417_v47 }
 0x24a   :  { %427 = vst [vmem:[#allocation11 + $0x8] sm:$0xff] %v423_v46 }
 0x24b   :  { %426 = vst [vmem:[#allocation11] sm:$0xff] %v418_v48 }
 0x24c   :  { %854 = shalt.err (!%p851_p2)
}
 0x24d   :  { %s855_s7 = scalar_lea.hbm %s1047_s8, 256 }
 0x24e   :  { %p856_p3 = scmp.ne.s32.totalorder %s1047_s8, %s855_s7  ;;  %p859_p4 = scmp.lt.u32.totalorder %s855_s7, %s1047_s8 }
 0x250   :  { %p861_p5 = pnand %p859_p4, %p856_p3 }
 0x252   :  { %864 = shalt.err (!%p861_p5)
}
 0x253   :  { %439 = dma.vmem_to_hbm [thread:$0]  %s434_s25, 256, %s1047_s8, [#allocation4], %s875_s17, %s875_s17, %s876_s18  }
 0x254   :  { %871 = dma.done.wait [#allocation4], 256  }
 0x255   :  { %872 = vsyncadd [#allocation4], 4294967040 }
 0x256   :  { %443 = vsyncpa [#allocation3], 1 }
 0x257   :  { %444 = vsyncpa [#allocation6], 1 }
 0x258   :  { %445 = vsyncpa [#allocation9], 1 }
 0x259   :  { %446 = vsyncpa [#allocation4], 1 }

</bundles_post_ra>
